<compile_context>
chip_gen: v5e
topology: v5e:2x2
jax: 0.10.0
libtpu: 0.0.40
codegen_flags: <defaults>
</compile_context>

<pallas_src>
import numpy as np
import jax
import jax.numpy as jnp
from jax import lax
from jax.experimental import pallas as pl
from jax.experimental.pallas import tpu as pltpu

_TM_MAX = 8192            # row-tile upper bound: per-step DMA >> ~0.35us step overhead
_SMALL_M_FASTPATH = 1024  # below this, let XLA fuse the dot+add instead of a pallas_call
_LANE = 128
_SUBLANE = 8


def _round_up(v, m):
    return ((v + m - 1) // m) * m


def _padded_vmem_bytes(rows, cols, dtype):
    """VMEM bytes of a (rows, cols) tile after (8, 128) layout padding."""
    itemsize = jnp.dtype(dtype).itemsize
    return (_round_up(max(rows, 1), _SUBLANE)
            * _round_up(max(cols, 1), _LANE)
            * itemsize)


def _choose_tm(m):
    """Row tile: as large as _TM_MAX allows, and when m > _TM_MAX rebalanced into
    an even number of near-equal tiles (both v7x TCs busy, no ragged tail tile)."""
    if m <= _TM_MAX:
        return max(_SUBLANE, _round_up(m, _SUBLANE))
    n_pairs = -(-m // (2 * _TM_MAX))   # ceil(m / (2*TM_MAX))
    n_tiles = 2 * n_pairs              # even tile count
    tm = -(-m // n_tiles)              # ceil(m / n_tiles)
    return _round_up(tm, _SUBLANE)


def _linear_kernel(x_ref, w_ref, b_ref, o_ref):
    # x_ref: (TM, K), w_ref: (K, Q), b_ref: (1, Q), o_ref: (TM, Q)
    acc = lax.dot_general(
        x_ref[...], w_ref[...],
        dimension_numbers=(((1,), (0,)), ((), ())),
        preferred_element_type=jnp.float32,
        precision=lax.Precision.HIGHEST,   # f32-accurate MXU passes; kernel is HBM-bound
    )
    o_ref[...] = (acc + b_ref[...].astype(jnp.float32)).astype(o_ref.dtype)


def project_params(x, weight, bias, *, force_pallas=False):
    """Equivalent of nn.Linear(input_size, num_quantiles)(x).

    x:      (..., input_size)
    weight: (num_quantiles, input_size)   -- PyTorch Linear convention
    bias:   (num_quantiles,)
    returns (..., num_quantiles)
    """
    *lead, k = x.shape
    q = weight.shape[0]
    m = 1
    for d in lead:
        m *= d

    x2 = x.reshape(m, k)

    # Small-M fast path: pallas_call fixed overhead + padded-tile DMA dominates;
    # XLA's fused dot+add is strictly faster and fuses with surrounding ops.
    if m < _SMALL_M_FASTPATH and not force_pallas:
        out = (jnp.dot(x2, weight.T, precision=lax.Precision.HIGHEST)
               + bias.astype(x.dtype))
        return out.reshape(*lead, q)

    w_kq = weight.T                 # one-time (K, Q) transpose, outside the kernel
    b2 = bias.reshape(1, q)

    tm = _choose_tm(m)
    grid_m = pl.cdiv(m, tm)

    itemsize = jnp.dtype(x.dtype).itemsize
    # Padded VMEM need: double-buffered x tile + out tile, resident weight/bias.
    vmem_need = (
        2 * _padded_vmem_bytes(tm, k, x.dtype)
        + 2 * _padded_vmem_bytes(tm, q, x.dtype)
        + _padded_vmem_bytes(k, q, w_kq.dtype)
        + _padded_vmem_bytes(1, q, bias.dtype)
    )
    # +4 MiB headroom; keep well under v7x's 64 MiB/TC physical VMEM.
    vmem_limit = int(min(vmem_need + (4 << 20), 56 << 20))

    # TODO(synk): optional lane densification (pack P rows per super-row with a
    # block-diagonal weight) would remove the 4x/14x lane padding of the x/out
    # tiles; skipped to keep the wrapper simple — the kernel is already HBM-bound.
    out = pl.pallas_call(
        _linear_kernel,
        out_shape=jax.ShapeDtypeStruct((m, q), x.dtype),
        grid_spec=pltpu.PrefetchScalarGridSpec(
            num_scalar_prefetch=0,
            grid=(grid_m,),
            in_specs=[
                pl.BlockSpec((tm, k), lambda i: (i, 0)),   # x row tile, streamed
                pl.BlockSpec((k, q), lambda i: (0, 0)),    # weight (K,Q), VMEM-resident
                pl.BlockSpec((1, q), lambda i: (0, 0)),    # bias, VMEM-resident
            ],
            out_specs=pl.BlockSpec((tm, q), lambda i: (i, 0)),
        ),
        compiler_params=pltpu.CompilerParams(
            dimension_semantics=("parallel",),
            vmem_limit_bytes=vmem_limit,
        ),
        cost_estimate=pl.CostEstimate(
            flops=2 * m * k * q,
            transcendentals=0,
            bytes_accessed=itemsize * (m * k + k * q + q + m * q),
        ),
    )(x2, w_kq, b2)

    return out.reshape(*lead, q)


if __name__ == "__main__":
    key = jax.random.PRNGKey(0)
    k_x, k_w, k_b = jax.random.split(key, 3)

    batch, seq, input_size = 2, 8, 32
    num_quantiles = 9

    x = jax.random.normal(k_x, (batch, seq, input_size), dtype=jnp.float32)

    # Deterministic parameter init (mimic PyTorch Linear's uniform(-1/sqrt(K), 1/sqrt(K)))
    bound = 1.0 / jnp.sqrt(jnp.float32(input_size))
    weight = jax.random.uniform(
        k_w, (num_quantiles, input_size), dtype=jnp.float32,
        minval=-bound, maxval=bound)
    bias = jax.random.uniform(
        k_b, (num_quantiles,), dtype=jnp.float32, minval=-bound, maxval=bound)

    # Force the Pallas path so the kernel is exercised at this small shape.
    y = project_params(x, weight, bias, force_pallas=True)
    y = jax.block_until_ready(y)

    # Also exercise the small-M XLA fast path.
    y_fast = jax.block_until_ready(project_params(x, weight, bias))

    # Exact f32 reference via numpy (same math as torch Linear).
    x_np = np.asarray(x).reshape(-1, input_size)
    ref = (x_np @ np.asarray(weight).T + np.asarray(bias)).reshape(
        batch, seq, num_quantiles)

    assert y.shape == (batch, seq, num_quantiles)
    assert np.allclose(np.asarray(y), ref, atol=1e-5, rtol=1e-5)
    assert np.allclose(np.asarray(y_fast), ref, atol=1e-5, rtol=1e-5)

    print("KERNEL_OK")
</pallas_src>

<mosaic_0001>
module attributes {stable_mosaic.version = 11 : i64} {
  func.func @_linear_kernel(%arg0: i32, %arg1: memref<16x32xf32, #tpu.memory_space<vmem>>, %arg2: memref<32x9xf32, #tpu.memory_space<vmem>>, %arg3: memref<1x9xf32, #tpu.memory_space<vmem>>, %arg4: memref<16x9xf32, #tpu.memory_space<vmem>>) attributes {dimension_semantics = [#tpu.dimension_semantics<parallel>], iteration_bounds = array<i64: 1>, scalar_prefetch = 0 : i64, scratch_operands = 0 : i64, tpu.core_type = #tpu.core_type<tc>, window_params = [{transform_indices = @transform_0, window_bounds = array<i64: 16, 32>}, {pipeline_mode = #tpu.pipeline_mode<synchronous>, transform_indices = @transform_1, window_bounds = array<i64: 32, 9>}, {pipeline_mode = #tpu.pipeline_mode<synchronous>, transform_indices = @transform_2, window_bounds = array<i64: 1, 9>}, {transform_indices = @transform_3, window_bounds = array<i64: 16, 9>}]} {
    %c0 = arith.constant 0 : index
    %c0_0 = arith.constant 0 : index
    %0 = vector.load %arg1[%c0, %c0_0] : memref<16x32xf32, #tpu.memory_space<vmem>>, vector<16x32xf32>
    %c0_1 = arith.constant 0 : index
    %c0_2 = arith.constant 0 : index
    %1 = vector.load %arg2[%c0_1, %c0_2] : memref<32x9xf32, #tpu.memory_space<vmem>>, vector<32x9xf32>
    %cst = arith.constant dense<0.000000e+00> : vector<16x9xf32>
    %2 = tpu.matmul %0, %1, %cst {dimension_numbers = #tpu.dot_dimension_numbers<[1], [0], [0], [1], [0, 0, 1, 1], [], []>, precision = #tpu.contract_precision<fp32>} : vector<16x32xf32>, vector<32x9xf32>, vector<16x9xf32> -> vector<16x9xf32>
    %c0_3 = arith.constant 0 : index
    %c0_4 = arith.constant 0 : index
    %3 = vector.load %arg3[%c0_3, %c0_4] : memref<1x9xf32, #tpu.memory_space<vmem>>, vector<1x9xf32>
    %4 = vector.broadcast %3 : vector<1x9xf32> to vector<16x9xf32>
    %5 = arith.addf %2, %4 : vector<16x9xf32>
    %c0_5 = arith.constant 0 : index
    %c0_6 = arith.constant 0 : index
    %6 = vector.load %arg4[%c0_5, %c0_6] : memref<16x9xf32, #tpu.memory_space<vmem>>, vector<16x9xf32>
    tpu.vector_store %arg4[%c0_5, %c0_6], %5 {strides = array<i32>} : memref<16x9xf32, #tpu.memory_space<vmem>>, vector<16x9xf32>,
    return
  }
  func.func @transform_0(%arg0: i32) -> (i32, i32) {
    %c0_i32 = arith.constant 0 : i32
    %c0_i32_0 = arith.constant 0 : i32
    return %arg0, %c0_i32 : i32, i32
  }
  func.func @transform_1(%arg0: i32) -> (i32, i32) {
    %c0_i32 = arith.constant 0 : i32
    %c0_i32_0 = arith.constant 0 : i32
    %c0_i32_1 = arith.constant 0 : i32
    return %c0_i32, %c0_i32_0 : i32, i32
  }
  func.func @transform_2(%arg0: i32) -> (i32, i32) {
    %c0_i32 = arith.constant 0 : i32
    %c0_i32_0 = arith.constant 0 : i32
    %c0_i32_1 = arith.constant 0 : i32
    return %c0_i32, %c0_i32_0 : i32, i32
  }
  func.func @transform_3(%arg0: i32) -> (i32, i32) {
    %c0_i32 = arith.constant 0 : i32
    %c0_i32_0 = arith.constant 0 : i32
    return %arg0, %c0_i32 : i32, i32
  }
}

</mosaic_0001>

<bundles_post_ra>
// kernel: tpu_custom_call.1
= control target key start
LH: loop header
LB: loop body
LE: loop exit
PB: predicated region body
PF: predicated region fallthrough
CT: control target
= control target key end

     0   :  { %vm25_vm0 = vcmask 261120   ;;  %s390_s0 = inlined_call_operand.vmem [shape: f32[16,32], index: 0, kind: input, shape index: {}]   ;;  %s391_s1 = inlined_call_operand.vmem [shape: f32[32,9], index: 1, kind: input, shape index: {}]   ;;  %s392_s2 = inlined_call_operand.vmem [shape: f32[1,9], index: 2, kind: input, shape index: {}]   ;;  %s393_s3 = inlined_call_operand.hbm [shape: f32[16,9], index: 3, kind: output, shape index: {}]  }
   0x1   :  { %v20_v0 = vld [vmem:[%s391_s1 + $0x18] sm:$0xff]  ;;  %v19_v1 = vld [vmem:[%s391_s1 + $0x10] sm:$0xff]  ;;  %v18_v2 = vld [vmem:[%s391_s1 + $0x8] sm:$0xff] }
   0x2   :  { %v339_v3 = vand.u32 4294901760, %v20_v0  ;;  %v341_v4 = vand.u32 4294901760, %v19_v1  ;;  %v343_v5 = vand.u32 4294901760, %v18_v2  ;;  %v17_v6 = vld [vmem:[%s391_s1] sm:$0xff]  ;;  %v16_v7 = vld [vmem:[%s390_s0 + $0x8] sm:$0xff] }
   0x3   :  { %v15_v8 = vld [vmem:[%s390_s0] sm:$0xff]  ;;  %v354_v9 = vand.u32 4294901760, %v17_v6  ;;  %v30_v10 = vsel %vm25_vm0, %v16_v7, 0 }
   0x4   :  { %v27_v11 = vsel %vm25_vm0, %v15_v8, 0  ;;  %269 = vmatpush.msra.mxu2 %v339_v3  ;;  %v82_v12 = vsub.f32 %v20_v0, %v339_v3  ;;  %v358_v13 = vand.u32 4294901760, %v30_v10  ;;  %v88_v14 = vsub.f32 %v19_v1, %v341_v4  ;;  %45 = vmatpush.msra.mxu0 %v339_v3 }
   0x5   :  { %v94_v15 = vsub.f32 %v18_v2, %v343_v5 }
   0x6   :  { %8 = vsyncpa [#allocation3], 0  ;;  %v100_v16 = vsub.f32 %v17_v6, %v354_v9  ;;  %v52_v17 = vand.u32 4294901760, %v27_v11  ;;  %270 = vmatpush.msra.mxu2 %v341_v4  ;;  %v83_v18 = vand.u32 4294901760, %v82_v12  ;;  %v61_v19 = vsub.f32 %v30_v10, %v358_v13  ;;  %47 = vmatpush.msra.mxu0 %v341_v4  ;;  %v280_v39 = vld [vmem:[%s392_s2] ss:$0 sm:$0xff] }
   0x7   :  { %v89_v20 = vand.u32 4294901760, %v88_v14  ;;  %v95_v21 = vand.u32 4294901760, %v94_v15  ;;  %vm248_vm1 = vcmask 72704   ;;  %s307_s2 = smov [#allocation2]   ;;  %s257_s27 = sshll.u32 %s393_s3, 4  ;;  %s258_s27 = int_to_ptr.hbm [resolvable:$true] %s257_s27 }
   0x8   :  { %v101_v22 = vand.u32 4294901760, %v100_v16  ;;  %v53_v23 = vsub.f32 %v27_v11, %v52_v17  ;;  %271 = vmatpush.msra.mxu2 %v343_v5  ;;  %v84_v24 = vsub.f32 %v82_v12, %v83_v18  ;;  %v62_v25 = vand.u32 4294901760, %v61_v19  ;;  %49 = vmatpush.msra.mxu0 %v343_v5  ;;  %s255_s24 = sshll.u32 %s307_s2, 4  ;;  %s308_s28 = smov 128   ;;  %s256_s24 = int_to_ptr.vmem [resolvable:$true] %s255_s24 }
   0x9   :  { %v90_v26 = vsub.f32 %v88_v14, %v89_v20  ;;  %v96_v27 = vsub.f32 %v94_v15, %v95_v21  ;;  %s309_s29 = smov 8  }
   0xa   :  { %v54_v28 = vand.u32 4294901760, %v53_v23  ;;  %272 = vmatpush.msra.mxu2 %v354_v9  ;;  %v85_v29 = vand.u32 4294901760, %v84_v24  ;;  %v63_v30 = vsub.f32 %v61_v19, %v62_v25  ;;  %v102_v32 = vsub.f32 %v100_v16, %v101_v22  ;;  %51 = vmatpush.msra.mxu0 %v354_v9 }
   0xb   :  { %v91_v31 = vand.u32 4294901760, %v90_v26  ;;  %v97_v35 = vand.u32 4294901760, %v96_v27 }
   0xc   :  { %128 = vmatpush.msrb.mxu2 %v82_v12  ;;  %v55_v33 = vsub.f32 %v53_v23, %v54_v28  ;;  %197 = vmatpush.msrb.mxu0 %v83_v18  ;;  %v64_v34 = vand.u32 4294901760, %v63_v30  ;;  %v103_v37 = vand.u32 4294901760, %v102_v32 }
   0xd   :  { %273 = vmatpush.msra.mxu3 %v85_v29  ;;  %86 = vmatpush.msra.mxu1 %v85_v29 }
   0xe   :  { %131 = vmatpush.msrb.mxu2 %v88_v14  ;;  %v56_v36 = vand.u32 4294901760, %v55_v33  ;;  %201 = vmatpush.msrb.mxu0 %v89_v20 }
   0xf   :  { %65 = vmatmul.f32.vlgmr.msra.gmra.mxu2 %v64_v34  ;;  %274 = vmatpush.msra.mxu3 %v91_v31 }
  0x10   :  { %134 = vmatpush.msrb.mxu2 %v94_v15  ;;  %92 = vmatpush.msra.mxu1 %v91_v31 }
  0x11   :  { %275 = vmatpush.msra.mxu3 %v97_v35  ;;  %57 = vmatmul.f32.vlgmr.msra.gmra.mxu0 %v56_v36 }
  0x12   :  { %137 = vmatpush.msrb.mxu2 %v100_v16  ;;  %98 = vmatpush.msra.mxu1 %v97_v35 }
  0x13   :  { %276 = vmatpush.msra.mxu3 %v103_v37  ;;  %205 = vmatpush.msrb.mxu0 %v95_v21 }
  0x14   :  { %110 = vmatmul.f32.vlgmr.msra.gmra.mxu3 %v358_v13  ;;  %104 = vmatpush.msra.mxu1 %v103_v37 }
  0x15   :  { %162 = vmatpush.msrb.mxu3 %v339_v3  ;;  %106 = vmatmul.f32.vlgmr.msra.gmra.mxu1 %v52_v17 }
  0x16   :  { %232 = vmatpush.msrb.mxu1 %v339_v3  ;;  %209 = vmatpush.msrb.mxu0 %v101_v22 }
  0x17   :  { %140 = vmatmul.f32.vlgmr.msrb.gmra.mxu2 %v53_v23  ;;  %164 = vmatpush.msrb.mxu3 %v341_v4 }
  0x18   :  { %234 = vmatpush.msrb.mxu1 %v341_v4 }
  0x19   :  { %166 = vmatpush.msrb.mxu3 %v343_v5  ;;  %211 = vmatmul.f32.vlgmr.msrb.gmra.mxu0 %v52_v17 }
  0x1a   :  { %236 = vmatpush.msrb.mxu1 %v343_v5 }
  0x1b   :  { %168 = vmatpush.msrb.mxu3 %v354_v9 }
  0x1c   :  { %172 = vmatmul.f32.vlgmr.msrb.gmra.mxu3 %v54_v28  ;;  %238 = vmatpush.msrb.mxu1 %v354_v9 }
  0x1d   :  { %240 = vmatmul.f32.vlgmr.msrb.gmra.mxu1 %v52_v17 }
  0x1f   :  { %145 = vmatmul.f32.gmra.mxu2 %v61_v19 }
  0x21   :  { %215 = vmatmul.f32.gmra.mxu0 %v358_v13 }
  0x24   :  { %178 = vmatmul.f32.gmra.mxu3 %v62_v25 }
  0x25   :  { %244 = vmatmul.f32.gmra.mxu1 %v358_v13 }
  0x8e   :  { %v58_v38 = vpop.f32.mrf.mxu0 }
  0x8f   :  { %v59_v41 = vadd.f32 %v280_v39, %v58_v38 }
  0x92   :  { %v66_v40 = vpop.f32.mrf.mxu2  ;;  %v107_v42 = vpop.f32.mrf.mxu1 }
  0x93   :  { %v108_v44 = vadd.f32 %v107_v42, %v59_v41  ;;  %v67_v50 = vadd.f32 %v280_v39, %v66_v40 }
  0x96   :  { %v212_v47 = vpop.f32.mrf.mxu0 }
  0x97   :  { %v111_v43 = vpop.f32.mrf.mxu3 }
  0x98   :  { %v112_v54 = vadd.f32 %v111_v43, %v67_v50 }
  0x9a   :  { %v141_v45 = vpop.f32.mrf.mxu2  ;;  %v241_v49 = vpop.f32.mrf.mxu1 }
  0x9b   :  { %v142_v46 = vadd.f32 %v141_v45, %v108_v44 }
  0x9e   :  { %v216_v58 = vpop.f32.mrf.mxu0 }
  0x9f   :  { %v173_v48 = vpop.f32.mrf.mxu3 }
  0xa0   :  { %v174_v51 = vadd.f32 %v173_v48, %v142_v46 }
  0xa2   :  { %v213_v52 = vadd.f32 %v212_v47, %v174_v51  ;;  %v146_v53 = vpop.f32.mrf.mxu2  ;;  %v245_v60 = vpop.f32.mrf.mxu1 }
  0xa3   :  { %v147_v56 = vadd.f32 %v146_v53, %v112_v54 }
  0xa4   :  { %v242_v55 = vadd.f32 %v241_v49, %v213_v52 }
  0xa6   :  { %249 = vst.msk [vmem:[#allocation2] sm:$0xff] %vm248_vm1, %v242_v55 }
  0xa7   :  { %v179_v57 = vpop.f32.mrf.mxu3 }
  0xa8   :  { %v180_v59 = vadd.f32 %v179_v57, %v147_v56 }
  0xaa   :  { %v217_v61 = vadd.f32 %v216_v58, %v180_v59 }
  0xac   :  { %v246_v62 = vadd.f32 %v245_v60, %v217_v61 }
  0xae   :  { %250 = vst.msk [vmem:[#allocation2 + $0x8] sm:$0xff] %vm248_vm1, %v246_v62 }
  0xaf   :  { %263 = dma.vmem_to_hbm [thread:$0]  %s256_s24, 256, %s258_s27, [#allocation3], %s308_s28, %s308_s28, %s309_s29  }
  0xb0   :  { %305 = dma.done.wait [#allocation3], 256  }
  0xb1   :  { %306 = vsyncadd [#allocation3], 4294967040 }
  0xb2   :  { %268 = vsyncpa [#allocation3], 1 }

</bundles_post_ra>
